<compile_context>
chip_gen: v7x
topology: tpu7x:2x2x1
jax: 0.10.0
libtpu: 0.0.40
codegen_flags: <defaults>
</compile_context>

<pallas_src>
import functools

import jax
import jax.numpy as jnp
from jax.experimental import pallas as pl
from jax.experimental.pallas import tpu as pltpu


def _cdiv(a: int, b: int) -> int:
    return -(-a // b)


def _round_up(x: int, m: int) -> int:
    return _cdiv(x, m) * m


def _gbn_kernel(x_ref, gamma_ref, beta_ref, o_ref, *, eps: float):
    # x_ref: (C_BLK, vbs, W) — C_BLK independent (super-)chunks per grid step.
    x32 = x_ref[...].astype(jnp.float32)

    # Two-pass per-chunk statistics over the virtual-batch axis (axis=1),
    # always accumulated in f32 (safe on v5e which has no bf16 VPU/EUP).
    mean = jnp.mean(x32, axis=1, keepdims=True)           # (C_BLK, 1, W)
    xc = x32 - mean                                        # (C_BLK, vbs, W)
    var = jnp.mean(xc * xc, axis=1, keepdims=True)         # biased variance

    # Fused affine: small (C_BLK, 1, W) math, then one mul + one add on the tile.
    scale = jax.lax.rsqrt(var + eps) * gamma_ref[...]       # (C_BLK, 1, W)
    o_ref[...] = (xc * scale + beta_ref[...]).astype(o_ref.dtype)


def _vmem_policy():
    """(vmem_limit_bytes, tile_budget_bytes), generation-aware."""
    cap = 64 << 20  # conservative fallback (safe on every generation)
    try:
        cap = int(pltpu.get_tpu_info().vmem_capacity_bytes)
    except Exception:
        pass
    limit = min(max((cap * 3) // 4, 32 << 20), 128 << 20)  # 128MiB→96MiB, 64MiB→48MiB
    budget = limit // 2                                     # headroom for double-buffering
    return limit, budget


def _choose_c_blk(n_units: int, vbs: int, width: int, itemsize: int,
                  budget_bytes: int) -> int:
    """Largest leading-block size whose live VMEM footprint fits the budget,
    while keeping ≥4 grid steps (when possible) and preferring an even step
    count (v7x megacore split)."""
    pad = _round_up(vbs, 8) * _round_up(width, 128)
    # 2x double-buffered input + 2x output blocks (x.dtype) + ~3 f32 in-kernel
    # temporaries (upcast/centered/squared) per leading unit.
    per_unit = pad * (4 * itemsize + 3 * 4)
    cap = min(max(1, budget_bytes // per_unit), n_units)

    # At least ~4 grid steps for pipeline steady state, then as big as possible.
    c = max(1, min(cap, _cdiv(n_units, min(4, n_units))))

    # Mild even-step preference for v7x's two TensorCores; never shrink the
    # block by more than ~2x to get it.
    steps = _cdiv(n_units, c)
    if steps % 2 == 1 and steps < n_units:
        for c2 in range(c - 1, max(0, c // 2), -1):
            if _cdiv(n_units, c2) % 2 == 0:
                c = c2
                break
    return c


def gbn_forward(x, gamma, beta, *, virtual_batch_size: int = 128,
                eps: float = 1e-5, lane_dense=None):
    """Ghost BatchNorm forward (training-mode statistics). x: (B, D)."""
    B, D = x.shape
    n_chunks = _cdiv(B, virtual_batch_size)
    # TODO(synk): torch.chunk allows a ragged last virtual batch (B % n_chunks != 0);
    # only the uniform case is implemented here.
    assert B % n_chunks == 0, "ragged last virtual batch not supported"
    vbs = B // n_chunks

    # ---- optional lane-dense repack for small D -------------------------------
    if lane_dense is None:
        lane_dense = (D <= 32) and (128 % D == 0) and (n_chunks > 1)
    G = 1
    if lane_dense:
        g_max = max(1, 128 // D)
        G = max((g for g in range(1, g_max + 1) if n_chunks % g == 0), default=1)

    gamma_f = gamma.astype(jnp.float32)
    beta_f = beta.astype(jnp.float32)
    if G > 1:
        n_units, width = n_chunks // G, G * D
        # packed[s, r, g*D + d] = x[(s*G + g)*vbs + r, d]
        x_in = (x.reshape(n_units, G, vbs, D)
                 .transpose(0, 2, 1, 3)
                 .reshape(n_units, vbs, width))
        gamma_in = jnp.tile(gamma_f, G).reshape(1, 1, width)
        beta_in = jnp.tile(beta_f, G).reshape(1, 1, width)
    else:
        n_units, width = n_chunks, D
        x_in = x.reshape(n_units, vbs, D)          # free, contiguous view
        gamma_in = gamma_f.reshape(1, 1, D)
        beta_in = beta_f.reshape(1, 1, D)

    # ---- tiling policy --------------------------------------------------------
    vmem_limit, tile_budget = _vmem_policy()
    c_blk = _choose_c_blk(n_units, vbs, width, x.dtype.itemsize, tile_budget)
    grid = (_cdiv(n_units, c_blk),)                # partial trailing block allowed

    itemsize = x.dtype.itemsize
    cost = pl.CostEstimate(
        flops=7 * B * D,                           # sub, sq, 2 reduce-adds, mul, add, ...
        transcendentals=n_chunks * D,              # rsqrt per (chunk, feature)
        bytes_accessed=2 * B * D * itemsize + 2 * D * 4,
    )

    out = pl.pallas_call(
        functools.partial(_gbn_kernel, eps=eps),
        out_shape=jax.ShapeDtypeStruct((n_units, vbs, width), x.dtype),
        grid_spec=pltpu.PrefetchScalarGridSpec(
            num_scalar_prefetch=0,
            grid=grid,
            in_specs=[
                pl.BlockSpec((c_blk, vbs, width), lambda i: (i, 0, 0)),  # X super-block
                pl.BlockSpec((1, 1, width), lambda i: (0, 0, 0)),        # gamma (bcast)
                pl.BlockSpec((1, 1, width), lambda i: (0, 0, 0)),        # beta  (bcast)
            ],
            out_specs=pl.BlockSpec((c_blk, vbs, width), lambda i: (i, 0, 0)),
        ),
        compiler_params=pltpu.CompilerParams(
            dimension_semantics=("parallel",),
            vmem_limit_bytes=vmem_limit,
        ),
        cost_estimate=cost,
    )(x_in, gamma_in, beta_in)

    if G > 1:
        out = (out.reshape(n_units, vbs, G, D)
                  .transpose(0, 2, 1, 3)
                  .reshape(B, D))
    else:
        out = out.reshape(B, D)
    return out


def gbn_reference(x, gamma, beta, *, virtual_batch_size: int, eps: float = 1e-5):
    """Pure-JAX reference mirroring the PyTorch forward (training mode)."""
    B, D = x.shape
    n_chunks = _cdiv(B, virtual_batch_size)
    vbs = B // n_chunks
    xr = x.reshape(n_chunks, vbs, D).astype(jnp.float32)
    mean = jnp.mean(xr, axis=1, keepdims=True)
    var = jnp.mean((xr - mean) ** 2, axis=1, keepdims=True)
    y = (xr - mean) / jnp.sqrt(var + eps) * gamma.reshape(1, 1, D) + beta.reshape(1, 1, D)
    return y.reshape(B, D).astype(x.dtype)


if __name__ == "__main__":
    key = jax.random.PRNGKey(0)
    k1, k2 = jax.random.split(key)

    # Config 1: GBN(input_dim=16, virtual_batch_size=8), batch of 32 rows.
    # Small D → exercises the lane-dense packed path. Non-zero mean stresses
    # the variance numerics.
    B, D, vbs = 32, 16, 8
    x = jax.random.normal(k1, (B, D), dtype=jnp.float32) * 3.0 + 5.0
    gamma = 1.0 + 0.05 * jnp.arange(D, dtype=jnp.float32)
    beta = 0.1 * jnp.arange(D, dtype=jnp.float32) - 0.5

    out = jax.block_until_ready(gbn_forward(x, gamma, beta, virtual_batch_size=vbs))
    ref = gbn_reference(x, gamma, beta, virtual_batch_size=vbs)
    assert out.shape == (B, D)
    assert jnp.max(jnp.abs(out - ref)) < 5e-4, "mismatch vs reference (packed path)"

    # Config 2: wide features, prime chunk count (7) → standard path with a
    # partial trailing super-block (c_blk=2 over 7 units → 4 grid steps).
    B2, D2, vbs2 = 56, 160, 8
    x2 = jax.random.normal(k2, (B2, D2), dtype=jnp.float32)
    gamma2 = jnp.linspace(0.5, 1.5, D2, dtype=jnp.float32)
    beta2 = jnp.linspace(-0.2, 0.2, D2, dtype=jnp.float32)

    out2 = jax.block_until_ready(gbn_forward(x2, gamma2, beta2, virtual_batch_size=vbs2))
    ref2 = gbn_reference(x2, gamma2, beta2, virtual_batch_size=vbs2)
    assert out2.shape == (B2, D2)
    assert jnp.max(jnp.abs(out2 - ref2)) < 5e-4, "mismatch vs reference (partial block path)"

    print("KERNEL_OK")
</pallas_src>

<mosaic_0001>
module attributes {stable_mosaic.version = 11 : i64} {
  func.func @_gbn_kernel(%arg0: i32, %arg1: memref<1x8x64xf32, #tpu.memory_space<vmem>>, %arg2: memref<1x1x64xf32, #tpu.memory_space<vmem>>, %arg3: memref<1x1x64xf32, #tpu.memory_space<vmem>>, %arg4: memref<1x8x64xf32, #tpu.memory_space<vmem>>) attributes {dimension_semantics = [#tpu.dimension_semantics<parallel>], iteration_bounds = array<i64: 1>, scalar_prefetch = 0 : i64, scratch_operands = 0 : i64, tpu.core_type = #tpu.core_type<tc>, window_params = [{transform_indices = @transform_0, window_bounds = array<i64: 1, 8, 64>}, {pipeline_mode = #tpu.pipeline_mode<synchronous>, transform_indices = @transform_1, window_bounds = array<i64: 1, 1, 64>}, {pipeline_mode = #tpu.pipeline_mode<synchronous>, transform_indices = @transform_2, window_bounds = array<i64: 1, 1, 64>}, {transform_indices = @transform_3, window_bounds = array<i64: 1, 8, 64>}]} {
    %c0 = arith.constant 0 : index
    %c0_0 = arith.constant 0 : index
    %c0_1 = arith.constant 0 : index
    %0 = vector.load %arg1[%c0, %c0_0, %c0_1] : memref<1x8x64xf32, #tpu.memory_space<vmem>>, vector<1x8x64xf32>
    %cst = arith.constant dense<0.000000e+00> : vector<1x64xf32>
    %1 = vector.multi_reduction <add>, %0, %cst [1] : vector<1x8x64xf32> to vector<1x64xf32>
    %2 = vector.shape_cast %1 : vector<1x64xf32> to vector<1x1x64xf32>
    %cst_2 = arith.constant 8.000000e+00 : f32
    %3 = vector.broadcast %cst_2 : f32 to vector<1x1x64xf32>
    %4 = arith.divf %2, %3 : vector<1x1x64xf32>
    %5 = vector.broadcast %4 : vector<1x1x64xf32> to vector<1x8x64xf32>
    %6 = arith.subf %0, %5 : vector<1x8x64xf32>
    %7 = arith.mulf %6, %6 : vector<1x8x64xf32>
    %cst_3 = arith.constant dense<0.000000e+00> : vector<1x64xf32>
    %8 = vector.multi_reduction <add>, %7, %cst_3 [1] : vector<1x8x64xf32> to vector<1x64xf32>
    %9 = vector.shape_cast %8 : vector<1x64xf32> to vector<1x1x64xf32>
    %cst_4 = arith.constant 8.000000e+00 : f32
    %10 = vector.broadcast %cst_4 : f32 to vector<1x1x64xf32>
    %11 = arith.divf %9, %10 : vector<1x1x64xf32>
    %cst_5 = arith.constant 9.99999974E-6 : f32
    %12 = vector.broadcast %cst_5 : f32 to vector<1x1x64xf32>
    %13 = arith.addf %11, %12 : vector<1x1x64xf32>
    %14 = math.rsqrt %13 : vector<1x1x64xf32>
    %c0_6 = arith.constant 0 : index
    %c0_7 = arith.constant 0 : index
    %c0_8 = arith.constant 0 : index
    %15 = vector.load %arg2[%c0_6, %c0_7, %c0_8] : memref<1x1x64xf32, #tpu.memory_space<vmem>>, vector<1x1x64xf32>
    %16 = arith.mulf %14, %15 : vector<1x1x64xf32>
    %17 = vector.broadcast %16 : vector<1x1x64xf32> to vector<1x8x64xf32>
    %18 = arith.mulf %6, %17 : vector<1x8x64xf32>
    %c0_9 = arith.constant 0 : index
    %c0_10 = arith.constant 0 : index
    %c0_11 = arith.constant 0 : index
    %19 = vector.load %arg3[%c0_9, %c0_10, %c0_11] : memref<1x1x64xf32, #tpu.memory_space<vmem>>, vector<1x1x64xf32>
    %20 = vector.broadcast %19 : vector<1x1x64xf32> to vector<1x8x64xf32>
    %21 = arith.addf %18, %20 : vector<1x8x64xf32>
    %c0_12 = arith.constant 0 : index
    %c0_13 = arith.constant 0 : index
    %c0_14 = arith.constant 0 : index
    %22 = vector.load %arg4[%c0_12, %c0_13, %c0_14] : memref<1x8x64xf32, #tpu.memory_space<vmem>>, vector<1x8x64xf32>
    tpu.vector_store %arg4[%c0_12, %c0_13, %c0_14], %21 {strides = array<i32>} : memref<1x8x64xf32, #tpu.memory_space<vmem>>, vector<1x8x64xf32>,
    return
  }
  func.func @transform_0(%arg0: i32) -> (i32, i32, i32) {
    %c0_i32 = arith.constant 0 : i32
    %c0_i32_0 = arith.constant 0 : i32
    %c0_i32_1 = arith.constant 0 : i32
    return %arg0, %c0_i32, %c0_i32_0 : i32, i32, i32
  }
  func.func @transform_1(%arg0: i32) -> (i32, i32, i32) {
    %c0_i32 = arith.constant 0 : i32
    %c0_i32_0 = arith.constant 0 : i32
    %c0_i32_1 = arith.constant 0 : i32
    %c0_i32_2 = arith.constant 0 : i32
    return %c0_i32, %c0_i32_0, %c0_i32_1 : i32, i32, i32
  }
  func.func @transform_2(%arg0: i32) -> (i32, i32, i32) {
    %c0_i32 = arith.constant 0 : i32
    %c0_i32_0 = arith.constant 0 : i32
    %c0_i32_1 = arith.constant 0 : i32
    %c0_i32_2 = arith.constant 0 : i32
    return %c0_i32, %c0_i32_0, %c0_i32_1 : i32, i32, i32
  }
  func.func @transform_3(%arg0: i32) -> (i32, i32, i32) {
    %c0_i32 = arith.constant 0 : i32
    %c0_i32_0 = arith.constant 0 : i32
    %c0_i32_1 = arith.constant 0 : i32
    return %arg0, %c0_i32, %c0_i32_0 : i32, i32, i32
  }
}

</mosaic_0001>

<bundles_post_ra>
// kernel: tpu_custom_call.1
= control target key start
LH: loop header
LB: loop body
LE: loop exit
PB: predicated region body
PF: predicated region fallthrough
CT: control target
= control target key end

     0   :  { %8 = vsyncpa [#allocation3], 0  ;;  %s189_s0 = inlined_call_operand.hbm [shape: f32[1,8,64], index: 0, kind: input, shape index: {}]   ;;  %s190_s1 = inlined_call_operand.vmem [shape: f32[1,1,64], index: 1, kind: input, shape index: {}]   ;;  %s191_s2 = inlined_call_operand.vmem [shape: f32[1,1,64], index: 2, kind: input, shape index: {}]   ;;  %s192_s3 = inlined_call_operand.hbm [shape: f32[1,8,64], index: 3, kind: output, shape index: {}]  }
   0x1   :  { %9 = vsyncpa [#allocation4], 0  ;;  %s134_s12 = smov [#allocation2]   ;;  %s86_s16 = scalar_lea.hbm %s189_s0, 128 }
   0x2   :  { %s16_s13 = sshll.u32 %s134_s12, 4  ;;  %p87_p0 = scmp.ne.s32.totalorder %s189_s0, %s86_s16  ;;  %s17_s13 = int_to_ptr.vmem [resolvable:$true] %s16_s13 }
   0x3   :  { %p90_p1 = scmp.lt.u32.totalorder %s86_s16, %s189_s0 }
   0x5   :  { %p92_p2 = pnand %p90_p1, %p87_p0 }
   0x7   :  { %95 = shalt.err (!%p92_p2)
}
   0x8   :  { %s96_s21 = scalar_lea.vmem %s17_s13, 128  ;;  %p101_p4 = scmp.lt.s32.totalorder %s17_s13, %s17_s13 }
   0x9   :  { %p97_p3 = scmp.ne.s32.totalorder %s17_s13, %s96_s21  ;;  %p102_p5 = scmp.lt.s32.totalorder %s96_s21, %s96_s21 }
   0xb   :  { %p103_p6 = por %p102_p5, %p101_p4 }
   0xd   :  { %p104_p7 = pnand %p103_p6, %p97_p3 }
   0xf   :  { %107 = shalt.err (!%p104_p7)
}
  0x10   :  { %19 = dma.hbm_to_vmem [thread:$0]  %s189_s0, 128, %s17_s13, [#allocation3]  }
  0x11   :  { %130 = dma.done.wait [#allocation3], 128  }
  0x12   :  { %131 = vsyncadd [#allocation3], 4294967168  ;;  %vm28_vm0 = vcmask 523264   ;;  %v27_v0 = vld [vmem:[#allocation2] sm:$0xff]  ;;  %v52_v20 = vlaneseq  ;;  %s135_s27 = smov [#allocation5]  }
  0x13   :  { %v29_v1 = vsel %vm28_vm0, %v27_v0, 0.0  ;;  %v50_v22 = vld [vmem:[%s190_s1] sm:$0x1]  ;;  %s72_s28 = sshll.u32 %s135_s27, 4  ;;  %s73_s28 = int_to_ptr.vmem [resolvable:$true] %s72_s28 }
  0x14   :  { %v30_v2 = vrot.slane %v29_v1, 4  ;;  %v53_v21 = vshrl.u32 %v52_v20, 7  ;;  %v81_v27 = vld [vmem:[%s191_s2] ss:$0 sm:$0xff]  ;;  %s108_s29 = scalar_lea.vmem %s73_s28, 128  ;;  %p113_p9 = scmp.lt.s32.totalorder %s73_s28, %s73_s28 }
  0x15   :  { %p109_p8 = scmp.ne.s32.totalorder %s73_s28, %s108_s29  ;;  %p114_p10 = scmp.lt.s32.totalorder %s108_s29, %s108_s29 }
  0x16   :  { %v31_v3 = vadd.f32 %v30_v2, %v29_v1  ;;  %v54_v23 = vsub.s32 0, %v53_v21 }
  0x17   :  { %p115_p11 = por %p114_p10, %p113_p9 }
  0x18   :  { %v32_v4 = vrot.slane %v31_v3, 2 }
  0x19   :  { %p116_p12 = pnand %p115_p11, %p109_p8 }
  0x1a   :  { %v33_v5 = vadd.f32 %v32_v4, %v31_v3 }
  0x1c   :  { %v34_v6 = vrot.slane %v33_v5, 1 }
  0x1e   :  { %v35_v7 = vadd.f32 %v34_v6, %v33_v5 }
  0x20   :  { %v37_v8 = vmul.f32 0.125, %v35_v7 }
  0x22   :  { %v38_v9 = vsub.f32 %v27_v0, %v37_v8 }
  0x24   :  { %v39_v10 = vmul.f32 %v38_v9, %v38_v9 }
  0x26   :  { %v40_v11 = vsel %vm28_vm0, %v39_v10, 0.0 }
  0x27   :  { %v41_v12 = vrot.slane %v40_v11, 4 }
  0x29   :  { %v42_v13 = vadd.f32 %v41_v12, %v40_v11 }
  0x2b   :  { %v43_v14 = vrot.slane %v42_v13, 2 }
  0x2d   :  { %v44_v15 = vadd.f32 %v43_v14, %v42_v13 }
  0x2f   :  { %v45_v16 = vrot.slane %v44_v15, 1 }
  0x31   :  { %v46_v17 = vadd.f32 %v45_v16, %v44_v15 }
  0x33   :  { %v47_v18 = vmul.f32 0.125, %v46_v17 }
  0x35   :  { %v48_v19 = vadd.f32 1e-05, %v47_v18 }
  0x37   :  { %84 = vrsqrt.f32 %v48_v19 }
  0x41   :  { %v85_v24 = vpop.eup %84 }
  0x42   :  { %v51_v25 = vmul.f32 %v85_v24, %v50_v22 }
  0x44   :  { %v55_v26 = vrot.slane %v51_v25, %v54_v23 }
  0x46   :  { %v56_v28 = vmul.f32 %v55_v26, %v38_v9 }
  0x48   :  { %v64_v29 = vadd.f32 %v81_v27, %v56_v28 }
  0x4a   :  { %65 = vst.msk [vmem:[#allocation5] sm:$0xff] %vm28_vm0, %v64_v29 }
  0x4b   :  { %119 = shalt.err (!%p116_p12)
}
  0x4c   :  { %s120_s4 = scalar_lea.hbm %s192_s3, 128 }
  0x4d   :  { %p121_p13 = scmp.ne.s32.totalorder %s192_s3, %s120_s4  ;;  %p124_p0 = scmp.lt.u32.totalorder %s120_s4, %s192_s3 }
  0x4f   :  { %p126_p1 = pnand %p124_p0, %p121_p13 }
  0x51   :  { %129 = shalt.err (!%p126_p1)
}
  0x52   :  { %75 = dma.vmem_to_hbm [thread:$0]  %s73_s28, 128, %s192_s3, [#allocation4]  }
  0x53   :  { %132 = dma.done.wait [#allocation4], 128  }
  0x54   :  { %133 = vsyncadd [#allocation4], 4294967168 }
  0x55   :  { %79 = vsyncpa [#allocation3], 1 }
  0x56   :  { %80 = vsyncpa [#allocation4], 1 }

</bundles_post_ra>
